<compile_context>
chip_gen: v5e
topology: v5e:2x2
jax: 0.10.0
libtpu: 0.0.40
codegen_flags: <defaults>
</compile_context>

<pallas_src>
import math
import functools

import jax
import jax.numpy as jnp
from jax.experimental import pallas as pl
from jax.experimental.pallas import tpu as pltpu


# ----------------------------------------------------------------------------
# Parameter ("buffer") setup — same math as the torch __init__.
# ----------------------------------------------------------------------------
def make_positional_encoding_table(max_len: int, d_model: int,
                                   dtype=jnp.float32) -> jax.Array:
    position = jnp.arange(max_len, dtype=jnp.float32)[:, None]             # (L, 1)
    div_term = jnp.exp(
        jnp.arange(0, d_model, 2, dtype=jnp.float32) * (-math.log(10000.0) / d_model)
    )                                                                      # (D/2,)
    angles = position * div_term                                           # (L, D/2)
    pe = jnp.zeros((max_len, 1, d_model), dtype=jnp.float32)
    pe = pe.at[:, 0, 0::2].set(jnp.sin(angles))
    pe = pe.at[:, 0, 1::2].set(jnp.cos(angles))
    return pe.astype(dtype)                                                # (L, 1, D)


# ----------------------------------------------------------------------------
# Kernels
# ----------------------------------------------------------------------------
def _pos_enc_eval_kernel(x_ref, pe_ref, o_ref):
    # (TILE_S, B, D) + (TILE_S, 1, D) — pe broadcasts over batch in-register.
    o_ref[...] = (x_ref[...] + pe_ref[...]).astype(o_ref.dtype)


def _pos_enc_dropout_kernel(x_ref, pe_ref, rand_ref, o_ref, *,
                            threshold: int, scale: float):
    y = x_ref[...] + pe_ref[...]                       # stays in input dtype
    keep = rand_ref[...] >= jnp.uint32(threshold)      # unsigned compare, full entropy
    y = jnp.where(keep, y * jnp.asarray(scale, dtype=y.dtype), jnp.zeros_like(y))
    o_ref[...] = y.astype(o_ref.dtype)


# ----------------------------------------------------------------------------
# Wrapper
# ----------------------------------------------------------------------------
def _pick_tile_s(S: int, B: int, D: int, itemsize: int, with_rand: bool,
                 budget_bytes: int = 12 << 20) -> int:
    """Largest seq-tile whose double-buffered blocks fit a conservative VMEM budget
    (safe under the scoped defaults of v5e=16MiB, v6e/v7x=32MiB)."""
    per_row = B * D * itemsize          # x tile
    per_row += D * itemsize             # pe tile
    per_row += B * D * itemsize         # out tile
    if with_rand:
        per_row += B * D * 4            # uint32 random bits
    per_row *= 2                        # double-buffered pipeline
    tile = max(1, budget_bytes // per_row)
    return int(min(tile, S))


def positional_encoding(x: jax.Array, pe_table: jax.Array, *,
                        p: float = 0.1, training: bool = False,
                        rng_key: jax.Array | None = None) -> jax.Array:
    """x: [seq_len, batch, d_model]. pe_table: [max_len, 1, d_model]."""
    S, B, D = x.shape
    max_len = pe_table.shape[0]
    assert S <= max_len, "sequence longer than positional-encoding table"
    pe = pe_table.astype(x.dtype)       # one-time cast; add runs in x.dtype

    use_dropout = training and p > 0.0
    if use_dropout and p >= 1.0:
        return jnp.zeros_like(x)        # degenerate case, matches torch Dropout(p=1)

    itemsize = jnp.dtype(x.dtype).itemsize
    tile_s = _pick_tile_s(S, B, D, itemsize, use_dropout)
    grid = (pl.cdiv(S, tile_s),)

    x_spec = pl.BlockSpec((tile_s, B, D), lambda i: (i, 0, 0))
    pe_spec = pl.BlockSpec((tile_s, 1, D), lambda i: (i, 0, 0))   # windows into full table
    out_spec = pl.BlockSpec((tile_s, B, D), lambda i: (i, 0, 0))

    compiler_params = pltpu.CompilerParams(
        dimension_semantics=("parallel",))   # no cross-iteration state -> megacore OK

    if use_dropout:
        if rng_key is None:
            rng_key = jax.random.PRNGKey(0)
        # Random stream differs from torch's RNG; dropout semantics are identical.
        rand = jax.random.bits(rng_key, (S, B, D), dtype=jnp.uint32)
        threshold = min(int(p * (2 ** 32)), 2 ** 32 - 1)
        scale = 1.0 / (1.0 - p)
        kernel = functools.partial(_pos_enc_dropout_kernel,
                                   threshold=threshold, scale=scale)
        return pl.pallas_call(
            kernel,
            out_shape=jax.ShapeDtypeStruct((S, B, D), x.dtype),
            grid=grid,
            in_specs=[x_spec, pe_spec,
                      pl.BlockSpec((tile_s, B, D), lambda i: (i, 0, 0))],
            out_specs=out_spec,
            compiler_params=compiler_params,
        )(x, pe, rand)

    return pl.pallas_call(
        _pos_enc_eval_kernel,
        out_shape=jax.ShapeDtypeStruct((S, B, D), x.dtype),
        grid=grid,
        in_specs=[x_spec, pe_spec],
        out_specs=out_spec,
        compiler_params=compiler_params,
    )(x, pe)


# ----------------------------------------------------------------------------
if __name__ == "__main__":
    d_model = 32
    max_len = 64
    seq_len = 8
    batch = 2
    p = 0.1

    key = jax.random.PRNGKey(0)
    kx, kd = jax.random.split(key)
    x = jax.random.normal(kx, (seq_len, batch, d_model), dtype=jnp.float32)
    pe_table = make_positional_encoding_table(max_len, d_model)

    # eval-mode forward (dropout identity) — check against pure-JAX reference
    y_eval = jax.block_until_ready(
        positional_encoding(x, pe_table, p=p, training=False))
    ref = x + pe_table[:seq_len]
    assert y_eval.shape == x.shape and y_eval.dtype == x.dtype
    assert jnp.allclose(y_eval, ref, atol=1e-6, rtol=1e-6)

    # training-mode forward (dropout applied in-kernel from streamed bits)
    y_train = jax.block_until_ready(
        positional_encoding(x, pe_table, p=p, training=True, rng_key=kd))
    assert y_train.shape == x.shape and y_train.dtype == x.dtype
    scale = 1.0 / (1.0 - p)
    # every surviving element must equal ref * 1/(1-p); dropped ones are exactly 0
    ok = jnp.where(y_train == 0, True,
                   jnp.isclose(y_train, ref * scale, atol=1e-5, rtol=1e-5))
    assert bool(ok.all())

    print("KERNEL_OK")
</pallas_src>

<mosaic_0001>
module attributes {stable_mosaic.version = 11 : i64} {
  func.func @_pos_enc_eval_kernel(%arg0: i32, %arg1: memref<8x2x32xf32, #tpu.memory_space<vmem>>, %arg2: memref<8x1x32xf32, #tpu.memory_space<vmem>>, %arg3: memref<8x2x32xf32, #tpu.memory_space<vmem>>) attributes {dimension_semantics = [#tpu.dimension_semantics<parallel>], iteration_bounds = array<i64: 1>, scalar_prefetch = 0 : i64, scratch_operands = 0 : i64, tpu.core_type = #tpu.core_type<tc>, window_params = [{transform_indices = @transform_0, window_bounds = array<i64: 8, 2, 32>}, {transform_indices = @transform_1, window_bounds = array<i64: 8, 1, 32>}, {transform_indices = @transform_2, window_bounds = array<i64: 8, 2, 32>}]} {
    %c0 = arith.constant 0 : index
    %c0_0 = arith.constant 0 : index
    %c0_1 = arith.constant 0 : index
    %0 = vector.load %arg1[%c0, %c0_0, %c0_1] : memref<8x2x32xf32, #tpu.memory_space<vmem>>, vector<8x2x32xf32>
    %c0_2 = arith.constant 0 : index
    %c0_3 = arith.constant 0 : index
    %c0_4 = arith.constant 0 : index
    %1 = vector.load %arg2[%c0_2, %c0_3, %c0_4] : memref<8x1x32xf32, #tpu.memory_space<vmem>>, vector<8x1x32xf32>
    %2 = vector.broadcast %1 : vector<8x1x32xf32> to vector<8x2x32xf32>
    %3 = arith.addf %0, %2 : vector<8x2x32xf32>
    %c0_5 = arith.constant 0 : index
    %c0_6 = arith.constant 0 : index
    %c0_7 = arith.constant 0 : index
    %4 = vector.load %arg3[%c0_5, %c0_6, %c0_7] : memref<8x2x32xf32, #tpu.memory_space<vmem>>, vector<8x2x32xf32>
    tpu.vector_store %arg3[%c0_5, %c0_6, %c0_7], %3 {strides = array<i32>} : memref<8x2x32xf32, #tpu.memory_space<vmem>>, vector<8x2x32xf32>,
    return
  }
  func.func @transform_0(%arg0: i32) -> (i32, i32, i32) {
    %c0_i32 = arith.constant 0 : i32
    %c0_i32_0 = arith.constant 0 : i32
    %c0_i32_1 = arith.constant 0 : i32
    return %arg0, %c0_i32, %c0_i32_0 : i32, i32, i32
  }
  func.func @transform_1(%arg0: i32) -> (i32, i32, i32) {
    %c0_i32 = arith.constant 0 : i32
    %c0_i32_0 = arith.constant 0 : i32
    %c0_i32_1 = arith.constant 0 : i32
    return %arg0, %c0_i32, %c0_i32_0 : i32, i32, i32
  }
  func.func @transform_2(%arg0: i32) -> (i32, i32, i32) {
    %c0_i32 = arith.constant 0 : i32
    %c0_i32_0 = arith.constant 0 : i32
    %c0_i32_1 = arith.constant 0 : i32
    return %arg0, %c0_i32, %c0_i32_0 : i32, i32, i32
  }
}

</mosaic_0001>

<bundles_post_ra>
// kernel: tpu_custom_call.1
= control target key start
LH: loop header
LB: loop body
LE: loop exit
PB: predicated region body
PF: predicated region fallthrough
CT: control target
= control target key end

     0   :  { %vm60_vm0 = vcmask 254976   ;;  %s201_s0 = inlined_call_operand.vmem [shape: f32[8,2,32], index: 0, kind: input, shape index: {}]   ;;  %s202_s1 = inlined_call_operand.vmem [shape: f32[64,1,32], index: 1, kind: input, shape index: {}]   ;;  %s203_s2 = inlined_call_operand.hbm [shape: f32[8,2,32], index: 2, kind: output, shape index: {}]  }
   0x1   :  { %v12_v0 = vld [vmem:[%s201_s0] sm:$0x3]  ;;  %v13_v2 = vld [vmem:[%s201_s0 + $0x2] sm:$0x3]  ;;  %v14_v5 = vld [vmem:[%s201_s0 + $0x4] sm:$0x3] }
   0x2   :  { %v90_v1 = vld [vmem:[%s202_s1] ss:$0 sm:$0xff]  ;;  %v91_v4 = vld [vmem:[%s202_s1 + $0x1] ss:$0 sm:$0xff]  ;;  %v92_v6 = vld [vmem:[%s202_s1 + $0x2] ss:$0 sm:$0xff] }
   0x3   :  { %v52_v3 = vadd.f32 %v90_v1, %v12_v0  ;;  %v15_v7 = vld [vmem:[%s201_s0 + $0x6] sm:$0x3]  ;;  %v53_v8 = vadd.f32 %v91_v4, %v13_v2  ;;  %v93_v9 = vld [vmem:[%s202_s1 + $0x3] ss:$0 sm:$0xff]  ;;  %v16_v10 = vld [vmem:[%s201_s0 + $0x8] sm:$0x3]  ;;  %v54_v11 = vadd.f32 %v92_v6, %v14_v5 }
   0x4   :  { %v94_v12 = vld [vmem:[%s202_s1 + $0x4] ss:$0 sm:$0xff]  ;;  %v17_v13 = vld [vmem:[%s201_s0 + $0xa] sm:$0x3]  ;;  %v55_v14 = vadd.f32 %v93_v9, %v15_v7  ;;  %v95_v15 = vld [vmem:[%s202_s1 + $0x5] ss:$0 sm:$0xff] }
   0x5   :  { %61 = vst.msk [vmem:[#allocation2] sm:$0x3] %vm60_vm0, %v52_v3  ;;  %v56_v16 = vadd.f32 %v94_v12, %v16_v10  ;;  %v18_v17 = vld [vmem:[%s201_s0 + $0xc] sm:$0x3]  ;;  %v57_v18 = vadd.f32 %v95_v15, %v17_v13  ;;  %v96_v19 = vld [vmem:[%s202_s1 + $0x6] ss:$0 sm:$0xff] }
   0x6   :  { %62 = vst.msk [vmem:[#allocation2 + $0x2] sm:$0x3] %vm60_vm0, %v53_v8  ;;  %v19_v20 = vld [vmem:[%s201_s0 + $0xe] sm:$0x3]  ;;  %v97_v21 = vld [vmem:[%s202_s1 + $0x7] ss:$0 sm:$0xff]  ;;  %v58_v22 = vadd.f32 %v96_v19, %v18_v17 }
   0x7   :  { %63 = vst.msk [vmem:[#allocation2 + $0x4] sm:$0x3] %vm60_vm0, %v54_v11 }
   0x8   :  { %64 = vst.msk [vmem:[#allocation2 + $0x6] sm:$0x3] %vm60_vm0, %v55_v14 }
   0x9   :  { %65 = vst.msk [vmem:[#allocation2 + $0x8] sm:$0x3] %vm60_vm0, %v56_v16 }
   0xa   :  { %66 = vst.msk [vmem:[#allocation2 + $0xa] sm:$0x3] %vm60_vm0, %v57_v18 }
   0xb   :  { %7 = vsyncpa [#allocation3], 0  ;;  %s124_s13 = smov [#allocation2]   ;;  %s75_s17 = sshll.u32 %s203_s2, 4  ;;  %v59_v23 = vadd.f32 %v97_v21, %v19_v20  ;;  %67 = vst.msk [vmem:[#allocation2 + $0xc] sm:$0x3] %vm60_vm0, %v58_v22  ;;  %s76_s17 = int_to_ptr.hbm [resolvable:$true] %s75_s17 }
   0xc   :  { %s73_s14 = sshll.u32 %s124_s13, 4  ;;  %s125_s0 = smov 32   ;;  %s74_s14 = int_to_ptr.vmem [resolvable:$true] %s73_s14 }
   0xd   :  { %68 = vst.msk [vmem:[#allocation2 + $0xe] sm:$0x3] %vm60_vm0, %v59_v23  ;;  %s126_s18 = smov 2  }
   0xe   :  { %81 = dma.vmem_to_hbm [thread:$0]  %s74_s14, 256, %s76_s17, [#allocation3], %s125_s0, %s125_s0, %s126_s18  }
   0xf   :  { %122 = dma.done.wait [#allocation3], 256  }
  0x10   :  { %123 = vsyncadd [#allocation3], 4294967040 }
  0x11   :  { %86 = vsyncpa [#allocation3], 1 }

</bundles_post_ra>
